<compile_context>
chip_gen: v5e
topology: v5e:2x2
jax: 0.10.0
libtpu: 0.0.40
codegen_flags: <defaults>
</compile_context>

<pallas_src>
import jax
import jax.numpy as jnp
from jax.experimental import pallas as pl
from jax.experimental.pallas import tpu as pltpu


_SUB = 128  # rows per inner sub-tile: keeps the f32 intermediate in vregs


def _round_up(n: int, m: int) -> int:
    return ((n + m - 1) // m) * m


def encoder_kernel(x_ref, w1_ref, b1_ref, w2_ref, b2_ref, o_ref):
    w1 = w1_ref[...]          # (D_in, H)  compute dtype (bf16)
    b1 = b1_ref[...]          # (1, H)     f32
    w2 = w2_ref[...]          # (H, H)     compute dtype (bf16)
    b2 = b2_ref[...]          # (1, H)     f32

    tb = x_ref.shape[0]
    sub = min(tb, _SUB)
    n_sub = tb // sub

    def sub_step(r):
        xs = x_ref[pl.ds(r, sub), :]
        # First linear + ReLU (MXU matmul, f32 accumulation; bias/ReLU in f32).
        h = jnp.dot(xs, w1, preferred_element_type=jnp.float32)
        h = jnp.maximum(h + b1, 0.0)
        # Second linear + ReLU (cast activations back to the MXU compute dtype).
        h2 = jnp.dot(h.astype(w2.dtype), w2, preferred_element_type=jnp.float32)
        o_ref[pl.ds(r, sub), :] = jnp.maximum(h2 + b2, 0.0).astype(o_ref.dtype)

    if n_sub == 1:
        sub_step(0)
    else:
        def body(s, carry):
            sub_step(pl.multiple_of(s * sub, sub))
            return carry
        jax.lax.fori_loop(0, n_sub, body, 0, unroll=True)


def prepare_encoder_params(w1, b1, w2, b2, *, compute_dtype=jnp.bfloat16):
    """One-time parameter prep (hoisted out of the forward pass).

    w1: (input_size, hidden), w2: (hidden, hidden); biases any shape with
    `hidden` elements.  Weights are cast to the MXU compute dtype; biases stay
    f32 (bias add / ReLU happen in f32 inside the kernel)."""
    H = w1.shape[1]
    return dict(
        w1=jnp.asarray(w1, compute_dtype),
        b1=jnp.reshape(jnp.asarray(b1, jnp.float32), (1, H)),
        w2=jnp.asarray(w2, compute_dtype),
        b2=jnp.reshape(jnp.asarray(b2, jnp.float32), (1, H)),
    )


def _pick_batch_tiling(B: int, tb):
    if tb is None:
        if B <= _SUB:
            tb = _round_up(max(B, 8), 8)                   # single tile, single sub-step
        else:
            tb = min(2 * _SUB, _round_up(pl.cdiv(B, 2), _SUB))  # cap at 256 rows/tile
    tb = max(8, _round_up(tb, 8))
    if tb > _SUB:
        tb = _round_up(tb, _SUB)                           # whole number of sub-tiles
    B_pad = _round_up(B, tb)
    n_tiles = B_pad // tb
    if n_tiles > 1 and n_tiles % 2 == 1:
        n_tiles += 1                                       # even count -> both v7x TCs busy
        B_pad = n_tiles * tb
    return tb, B_pad, n_tiles


def encoder_forward(params, x, *, tb=None):
    """x: (B, input_size) f32 (or bf16). Returns (B, hidden) in x.dtype."""
    w1, b1, w2, b2 = params["w1"], params["b1"], params["w2"], params["b2"]
    B, D_in = x.shape
    H = w1.shape[1]
    out_dtype = x.dtype
    compute_dtype = w1.dtype

    tb, B_pad, n_tiles = _pick_batch_tiling(B, tb)

    # Only the batch axis is padded (rows of garbage are sliced off below).
    x_c = x.astype(compute_dtype)
    if B_pad != B:
        x_c = jnp.pad(x_c, ((0, B_pad - B), (0, 0)))

    # Weights/biases use constant index_maps (resident across the grid).  Once
    # their footprint is big enough to matter, single-buffer them.
    bpe_c = jnp.dtype(compute_dtype).itemsize
    weight_res_bytes = (D_in * H + H * H) * bpe_c + 2 * H * 4
    const_mode = pl.Buffered(1) if weight_res_bytes > (2 << 20) else None
    wbuf = 1 if const_mode is not None else 2

    # Explicit VMEM budget: double-buffered x/out tiles + resident weights +
    # the f32 sub-tile intermediate (with slack), clamped under v7x's 64 MiB.
    sub = min(tb, _SUB)
    bpe_o = jnp.dtype(out_dtype).itemsize
    tile_bytes = 2 * tb * (D_in * bpe_c + H * bpe_o)
    interm_bytes = 2 * sub * H * 4
    vmem_limit = min(
        int(1.25 * (tile_bytes + wbuf * weight_res_bytes + interm_bytes)) + (2 << 20),
        48 << 20,
    )

    out_p = pl.pallas_call(
        encoder_kernel,
        out_shape=jax.ShapeDtypeStruct((B_pad, H), out_dtype),
        grid_spec=pltpu.PrefetchScalarGridSpec(
            num_scalar_prefetch=0,
            grid=(n_tiles,),
            in_specs=[
                pl.BlockSpec((tb, D_in), lambda i: (i, 0)),                          # x tile
                pl.BlockSpec((D_in, H), lambda i: (0, 0), pipeline_mode=const_mode),  # W1
                pl.BlockSpec((1, H), lambda i: (0, 0), pipeline_mode=const_mode),     # b1
                pl.BlockSpec((H, H), lambda i: (0, 0), pipeline_mode=const_mode),     # W2
                pl.BlockSpec((1, H), lambda i: (0, 0), pipeline_mode=const_mode),     # b2
            ],
            out_specs=pl.BlockSpec((tb, H), lambda i: (i, 0)),
        ),
        compiler_params=pltpu.CompilerParams(
            dimension_semantics=("parallel",),
            vmem_limit_bytes=vmem_limit,
        ),
    )(x_c, w1, b1, w2, b2)

    return out_p[:B] if B_pad != B else out_p


def encoder_forward_fused(params, x):
    """Plain-XLA path: at tiny sizes (B <= ~64, D_in/H <= 128) fused XLA matmuls
    beat the pallas_call's fixed launch + grid-step overhead."""
    h = jnp.dot(x.astype(params["w1"].dtype), params["w1"],
                preferred_element_type=jnp.float32) + params["b1"]
    h = jnp.maximum(h, 0.0)
    h2 = jnp.dot(h.astype(params["w2"].dtype), params["w2"],
                 preferred_element_type=jnp.float32) + params["b2"]
    return jnp.maximum(h2, 0.0).astype(x.dtype)


def encoder_forward_auto(params, x, *, tb=None):
    B, D_in = x.shape
    H = params["w1"].shape[1]
    if B <= 64 and max(D_in, H) <= 128:
        return encoder_forward_fused(params, x)
    return encoder_forward(params, x, tb=tb)


if __name__ == "__main__":
    # Small shapes consistent with the module's forward: x is (batch, input_size).
    B, INPUT_SIZE, HIDDEN_SIZE = 8, 16, 32

    key = jax.random.PRNGKey(0)
    kx, k1, k2, k3, k4, kx2 = jax.random.split(key, 6)

    x = jax.random.normal(kx, (B, INPUT_SIZE), dtype=jnp.float32)

    # Deterministic parameter init (PyTorch-like uniform bounds).
    bound1 = 1.0 / (INPUT_SIZE ** 0.5)
    bound2 = 1.0 / (HIDDEN_SIZE ** 0.5)
    w1 = jax.random.uniform(k1, (INPUT_SIZE, HIDDEN_SIZE), jnp.float32, -bound1, bound1)
    b1 = jax.random.uniform(k2, (HIDDEN_SIZE,), jnp.float32, -bound1, bound1)
    w2 = jax.random.uniform(k3, (HIDDEN_SIZE, HIDDEN_SIZE), jnp.float32, -bound2, bound2)
    b2 = jax.random.uniform(k4, (HIDDEN_SIZE,), jnp.float32, -bound2, bound2)

    # One-time parameter prep (bf16 weights, f32 biases) — hoisted out of forward.
    params = prepare_encoder_params(w1, b1, w2, b2)

    # Jit the whole wrapper so the per-call cast / row-pad / slice fuse.
    fwd = jax.jit(encoder_forward)

    # Case 1: tiny batch (single tile, single sub-step) — validates the Pallas path.
    out = jax.block_until_ready(fwd(params, x))
    ref = jnp.maximum(jnp.maximum(x @ w1 + b1[None, :], 0.0) @ w2 + b2[None, :], 0.0)
    assert out.shape == (B, HIDDEN_SIZE)
    # bf16 MXU inputs with f32 accumulation -> loosened tolerance vs f32 reference.
    assert jnp.allclose(out, ref, atol=3e-2, rtol=3e-2), float(jnp.max(jnp.abs(out - ref)))

    # Case 2: larger batch exercises the multi-tile grid (even tile count) and
    # the in-kernel 128-row sub-tiling loop.
    B2 = 300
    x2 = jax.random.normal(kx2, (B2, INPUT_SIZE), dtype=jnp.float32)
    out2 = jax.block_until_ready(fwd(params, x2))
    ref2 = jnp.maximum(jnp.maximum(x2 @ w1 + b1[None, :], 0.0) @ w2 + b2[None, :], 0.0)
    assert out2.shape == (B2, HIDDEN_SIZE)
    assert jnp.allclose(out2, ref2, atol=3e-2, rtol=3e-2), float(jnp.max(jnp.abs(out2 - ref2)))

    print("KERNEL_OK")
</pallas_src>

<mosaic_0001>
module attributes {stable_mosaic.version = 11 : i64} {
  func.func @encoder_kernel(%arg0: i32, %arg1: memref<8x16xbf16, #tpu.memory_space<vmem>>, %arg2: memref<16x32xbf16, #tpu.memory_space<vmem>>, %arg3: memref<1x32xf32, #tpu.memory_space<vmem>>, %arg4: memref<32x32xbf16, #tpu.memory_space<vmem>>, %arg5: memref<1x32xf32, #tpu.memory_space<vmem>>, %arg6: memref<8x32xf32, #tpu.memory_space<vmem>>) attributes {dimension_semantics = [#tpu.dimension_semantics<parallel>], iteration_bounds = array<i64: 1>, scalar_prefetch = 0 : i64, scratch_operands = 0 : i64, tpu.core_type = #tpu.core_type<tc>, window_params = [{transform_indices = @transform_0, window_bounds = array<i64: 8, 16>}, {pipeline_mode = #tpu.pipeline_mode<synchronous>, transform_indices = @transform_1, window_bounds = array<i64: 16, 32>}, {pipeline_mode = #tpu.pipeline_mode<synchronous>, transform_indices = @transform_2, window_bounds = array<i64: 1, 32>}, {pipeline_mode = #tpu.pipeline_mode<synchronous>, transform_indices = @transform_3, window_bounds = array<i64: 32, 32>}, {pipeline_mode = #tpu.pipeline_mode<synchronous>, transform_indices = @transform_4, window_bounds = array<i64: 1, 32>}, {transform_indices = @transform_5, window_bounds = array<i64: 8, 32>}]} {
    %c0 = arith.constant 0 : index
    %c0_0 = arith.constant 0 : index
    %0 = vector.load %arg2[%c0, %c0_0] : memref<16x32xbf16, #tpu.memory_space<vmem>>, vector<16x32xbf16>
    %c0_1 = arith.constant 0 : index
    %c0_2 = arith.constant 0 : index
    %1 = vector.load %arg3[%c0_1, %c0_2] : memref<1x32xf32, #tpu.memory_space<vmem>>, vector<1x32xf32>
    %c0_3 = arith.constant 0 : index
    %c0_4 = arith.constant 0 : index
    %2 = vector.load %arg4[%c0_3, %c0_4] : memref<32x32xbf16, #tpu.memory_space<vmem>>, vector<32x32xbf16>
    %c0_5 = arith.constant 0 : index
    %c0_6 = arith.constant 0 : index
    %3 = vector.load %arg5[%c0_5, %c0_6] : memref<1x32xf32, #tpu.memory_space<vmem>>, vector<1x32xf32>
    %c0_7 = arith.constant 0 : index
    %c0_8 = arith.constant 0 : index
    %4 = vector.load %arg1[%c0_7, %c0_8] : memref<8x16xbf16, #tpu.memory_space<vmem>>, vector<8x16xbf16>
    %cst = arith.constant dense<0.000000e+00> : vector<8x32xf32>
    %5 = tpu.matmul %4, %0, %cst {dimension_numbers = #tpu.dot_dimension_numbers<[1], [0], [0], [1], [0, 0, 1, 1], [], []>} : vector<8x16xbf16>, vector<16x32xbf16>, vector<8x32xf32> -> vector<8x32xf32>
    %6 = vector.broadcast %1 : vector<1x32xf32> to vector<8x32xf32>
    %7 = arith.addf %5, %6 : vector<8x32xf32>
    %cst_9 = arith.constant 0.000000e+00 : f32
    %8 = vector.broadcast %cst_9 : f32 to vector<8x32xf32>
    %9 = arith.maximumf %7, %8 : vector<8x32xf32>
    %10 = arith.truncf %9 : vector<8x32xf32> to vector<8x32xbf16>
    %cst_10 = arith.constant dense<0.000000e+00> : vector<8x32xf32>
    %11 = tpu.matmul %10, %2, %cst_10 {dimension_numbers = #tpu.dot_dimension_numbers<[1], [0], [0], [1], [0, 0, 1, 1], [], []>} : vector<8x32xbf16>, vector<32x32xbf16>, vector<8x32xf32> -> vector<8x32xf32>
    %12 = vector.broadcast %3 : vector<1x32xf32> to vector<8x32xf32>
    %13 = arith.addf %11, %12 : vector<8x32xf32>
    %cst_11 = arith.constant 0.000000e+00 : f32
    %14 = vector.broadcast %cst_11 : f32 to vector<8x32xf32>
    %15 = arith.maximumf %13, %14 : vector<8x32xf32>
    %c0_12 = arith.constant 0 : index
    %c0_13 = arith.constant 0 : index
    %16 = vector.load %arg6[%c0_12, %c0_13] : memref<8x32xf32, #tpu.memory_space<vmem>>, vector<8x32xf32>
    tpu.vector_store %arg6[%c0_12, %c0_13], %15 {strides = array<i32>} : memref<8x32xf32, #tpu.memory_space<vmem>>, vector<8x32xf32>,
    return
  }
  func.func @transform_0(%arg0: i32) -> (i32, i32) {
    %c0_i32 = arith.constant 0 : i32
    %c0_i32_0 = arith.constant 0 : i32
    return %arg0, %c0_i32 : i32, i32
  }
  func.func @transform_1(%arg0: i32) -> (i32, i32) {
    %c0_i32 = arith.constant 0 : i32
    %c0_i32_0 = arith.constant 0 : i32
    %c0_i32_1 = arith.constant 0 : i32
    return %c0_i32, %c0_i32_0 : i32, i32
  }
  func.func @transform_2(%arg0: i32) -> (i32, i32) {
    %c0_i32 = arith.constant 0 : i32
    %c0_i32_0 = arith.constant 0 : i32
    %c0_i32_1 = arith.constant 0 : i32
    return %c0_i32, %c0_i32_0 : i32, i32
  }
  func.func @transform_3(%arg0: i32) -> (i32, i32) {
    %c0_i32 = arith.constant 0 : i32
    %c0_i32_0 = arith.constant 0 : i32
    %c0_i32_1 = arith.constant 0 : i32
    return %c0_i32, %c0_i32_0 : i32, i32
  }
  func.func @transform_4(%arg0: i32) -> (i32, i32) {
    %c0_i32 = arith.constant 0 : i32
    %c0_i32_0 = arith.constant 0 : i32
    %c0_i32_1 = arith.constant 0 : i32
    return %c0_i32, %c0_i32_0 : i32, i32
  }
  func.func @transform_5(%arg0: i32) -> (i32, i32) {
    %c0_i32 = arith.constant 0 : i32
    %c0_i32_0 = arith.constant 0 : i32
    return %arg0, %c0_i32 : i32, i32
  }
}

</mosaic_0001>

<bundles_post_ra>
// kernel: encoder_forward.1
= control target key start
LH: loop header
LB: loop body
LE: loop exit
PB: predicated region body
PF: predicated region fallthrough
CT: control target
= control target key end

     0   :  { %10 = vsyncpa [#allocation3], 0  ;;  %s253_s0 = inlined_call_operand.vmem [shape: bf16[8,16], index: 0, kind: input, shape index: {}]   ;;  %s254_s1 = inlined_call_operand.vmem [shape: bf16[16,32], index: 1, kind: input, shape index: {}]   ;;  %s255_s2 = inlined_call_operand.vmem [shape: f32[1,32], index: 2, kind: input, shape index: {}]   ;;  %s256_s3 = inlined_call_operand.hbm [shape: bf16[32,32], index: 3, kind: input, shape index: {}]   ;;  %s257_s4 = inlined_call_operand.vmem [shape: f32[1,32], index: 4, kind: input, shape index: {}]   ;;  %s258_s5 = inlined_call_operand.hbm [shape: f32[8,32], index: 5, kind: output, shape index: {}]  }
   0x1   :  { %11 = vsyncpa [#allocation4], 0  ;;  %s22_s20 = sshll.u32 %s256_s3, 4  ;;  %s201_s21 = smov [#allocation2]   ;;  %s23_s20 = int_to_ptr.hbm [resolvable:$true] %s22_s20 }
   0x2   :  { %s24_s22 = sshll.u32 %s201_s21, 4  ;;  %s202_s23 = smov 64   ;;  %s25_s22 = int_to_ptr.vmem [resolvable:$true] %s24_s22 }
   0x3   :  { %s203_s24 = smov 4  }
   0x4   :  { %30 = dma.hbm_to_vmem [thread:$0]  %s23_s20, 256, %s25_s22, [#allocation3], %s202_s23, %s202_s23, %s203_s24  }
   0x5   :  { %197 = dma.done.wait [#allocation3], 256  }
   0x6   :  { %198 = vsyncadd [#allocation3], 4294967040  ;;  %v140_v0 = vld [vmem:[%s254_s1] sm:$0xff]  ;;  %vm56_vm0 = vcmask 130048   ;;  %v142_v2 = vld [vmem:[#allocation2 + $0x8] sm:$0xff]  ;;  %vm90_vm1 = vcmask 261120  }
   0x7   :  { %67 = vmatpush.bf16.msra.mxu0 %v140_v0  ;;  %v46_v1 = vld [vmem:[%s253_s0] sm:$0xf]  ;;  %100 = vmatpush.bf16.msra.mxu1 %v142_v2  ;;  %s204_s0 = smov [#allocation5]   ;;  %s116_s9 = sshll.u32 %s258_s5, 4  ;;  %s117_s9 = int_to_ptr.hbm [resolvable:$true] %s116_s9 }
   0x8   :  { %v141_v3 = vld [vmem:[#allocation2] sm:$0xff]  ;;  %s114_s6 = sshll.u32 %s204_s0, 4  ;;  %s115_s6 = int_to_ptr.vmem [resolvable:$true] %s114_s6 }
   0x9   :  { %v147_v4 = vld [vmem:[%s255_s2] ss:$0 sm:$0xff] }
   0xa   :  { %130 = vmatmul.msk.bf16.vlgmr.msra.gmra.mxu0 %vm56_vm0, %v46_v1  ;;  %v148_v10 = vld [vmem:[%s257_s4] ss:$0 sm:$0xff] }
   0xb   :  { %101 = vmatpush.bf16.msra.mxu1 %v141_v3 }
  0x87   :  { %v69_v5 = vpop.f32.mrf.mxu0 }
  0x88   :  { %v70_v6 = vadd.f32 %v147_v4, %v69_v5 }
  0x8a   :  { %v73_v7 = vmax.f32 %v70_v6, 0.0 }
  0x8c   :  { %v74_v8 = vpack.c.bf16 %v73_v7, %v73_v7 }
  0x8e   :  { %139 = vmatmul.msk.bf16.vlgmr.msra.gmra.mxu1 %vm90_vm1, %v74_v8 }
  0x8f   :  { %v71_v9 = vpop.f32.mrf.mxu0 }
 0x10b   :  { %v103_v11 = vpop.f32.mrf.mxu1 }
 0x10c   :  { %v104_v12 = vadd.f32 %v148_v10, %v103_v11 }
 0x10e   :  { %v107_v13 = vmax.f32 %v104_v12, 0.0 }
 0x110   :  { %108 = vst.msk [vmem:[#allocation5] sm:$0xff] %vm90_vm1, %v107_v13 }
 0x111   :  { %119 = dma.vmem_to_hbm [thread:$0]  %s115_s6, 128, %s117_s9, [#allocation4]  }
 0x113   :  { %v105_v14 = vpop.f32.mrf.mxu1 }
 0x114   :  { %199 = dma.done.wait [#allocation4], 128  }
 0x115   :  { %200 = vsyncadd [#allocation4], 4294967168 }
 0x116   :  { %124 = vsyncpa [#allocation3], 1 }
 0x117   :  { %125 = vsyncpa [#allocation4], 1 }

</bundles_post_ra>
